<compile_context>
chip_gen: v5e
topology: v5e:2x2
jax: 0.10.0
libtpu: 0.0.40
codegen_flags: <defaults>
</compile_context>

<pallas_src>
import jax
import jax.numpy as jnp
from jax.experimental import pallas as pl
from jax.experimental.pallas import tpu as pltpu

N = 2                       # batch
C, H, W = 1, 64, 64         # Conv2d(in_channels=1) + Linear(in_features=4096) => 1x64x64
K = C * H * W               # 4096
NUM_CLASSES = 10            # stand-in width for the injected img_classifier
OUT = 1 + NUM_CLASSES       # fused output: col 0 = "fake" head, cols 1.. = class logits


def _discrim_head_kernel(x_ref, w_ref, b_ref, out_ref):
    x = x_ref[...]                                  # (N, K)    f32
    w = w_ref[...]                                  # (OUT, K)  f32, lane-dense
    # VPU contraction: out[n, o] = sum_k x[n, k] * w[o, k].
    # Broadcast-multiply + lane reduce; no MXU push, no in-kernel transpose
    # back to the lane-sparse (K, OUT) layout.
    prod = x[:, None, :] * w[None, :, :]            # (N, OUT, K)
    z = jnp.sum(prod, axis=-1) + b_ref[...]         # (N, OUT)
    # Column 0 is the "fake" head (nn.Sigmoid); remaining columns are the raw
    # classifier logits.  Elementwise select keeps everything on the VPU/EUP.
    col = jax.lax.broadcasted_iota(jnp.int32, z.shape, 1)
    sig = 1.0 / (1.0 + jnp.exp(-z))
    out_ref[...] = jnp.where(col == 0, sig, z)


def pack_discrim_weights(w_dense, b_dense, w_cls, b_cls):
    """Pack both heads lane-dense: W (OUT, K), b (1, OUT).

    PyTorch Linear weights are already (out_features, in_features), so the
    concat keeps K (=4096) as the minor dim -> no 128-lane zero padding in
    HBM/VMEM (~256 KB streamed per call instead of ~2 MiB).  Done once
    outside the per-call hot path.
    """
    w = jnp.concatenate([w_dense, w_cls], axis=0).astype(jnp.float32)    # (OUT, K)
    b = jnp.concatenate([b_dense, b_cls])[None, :].astype(jnp.float32)   # (1, OUT)
    return w, b


def _tile_padded_bytes(shape, itemsize=4):
    """True HBM footprint of an f32 array under the (8, 128) tiled layout."""
    shape = tuple(shape)
    if len(shape) == 1:
        shape = (1,) + shape
    lead = 1
    for d in shape[:-2]:
        lead *= d
    sub = pl.cdiv(shape[-2], 8) * 8
    lane = pl.cdiv(shape[-1], 128) * 128
    return lead * sub * lane * itemsize


def discrim_rgb_forward(x_flat, w_packed, b_packed):
    """x_flat: (N, 4096) pre-flattened activation (== img.reshape(N, -1)).

    The producer should emit (N, 4096) directly; reshaping a (N, 1, 64, 64)
    image immediately before the call costs an extra XLA relayout op.
    """
    # TODO(synk): the conv2dPack stack in the reference forward() is computed
    # and then discarded (the flatten/dense path reuses `img`), so it does not
    # affect the returned values and is intentionally not implemented; its
    # BatchNorm running-stat / Dropout side effects in training mode are
    # therefore also skipped.
    n, k = x_flat.shape
    out_w = w_packed.shape[0]
    x_flat = x_flat.astype(jnp.float32)

    cost = pl.CostEstimate(
        flops=2 * n * k * out_w,
        transcendentals=n * out_w,
        bytes_accessed=(_tile_padded_bytes((n, k))
                        + _tile_padded_bytes(w_packed.shape)
                        + _tile_padded_bytes(b_packed.shape)
                        + _tile_padded_bytes((n, out_w))),
    )

    out = pl.pallas_call(
        _discrim_head_kernel,
        out_shape=jax.ShapeDtypeStruct((n, out_w), jnp.float32),
        grid_spec=pl.GridSpec(
            grid=(1,),
            in_specs=[
                pl.BlockSpec((n, k), lambda i: (0, 0)),        # x (whole array)
                pl.BlockSpec((out_w, k), lambda i: (0, 0)),    # fused W, lane-dense
                pl.BlockSpec((1, out_w), lambda i: (0, 0)),    # fused b
            ],
            out_specs=pl.BlockSpec((n, out_w), lambda i: (0, 0)),
        ),
        compiler_params=pltpu.CompilerParams(
            dimension_semantics=("arbitrary",)),
        cost_estimate=cost,
    )(x_flat, w_packed, b_packed)

    fake = out[:, :1]            # (N, 1)           == sigmoid(Linear(4096, 1))
    img_class = out[:, 1:]       # (N, NUM_CLASSES) == stand-in img_classifier logits
    return fake, img_class


if __name__ == "__main__":
    key = jax.random.PRNGKey(0)
    k_img, k_wd, k_bd, k_wc, k_bc = jax.random.split(key, 5)

    img = jax.random.normal(k_img, (N, C, H, W), dtype=jnp.float32)
    # Producer-side flatten (the module's img.reshape(N, -1)); done once here
    # so the kernel is fed a lane-dense (N, 4096) activation directly.
    x_flat = img.reshape(N, -1)

    # Deterministic PyTorch-Linear-style init: U(-1/sqrt(fan_in), 1/sqrt(fan_in)).
    bound = 1.0 / float(K) ** 0.5
    w_dense = jax.random.uniform(k_wd, (1, K), jnp.float32, -bound, bound)
    b_dense = jax.random.uniform(k_bd, (1,), jnp.float32, -bound, bound)
    w_cls = jax.random.uniform(k_wc, (NUM_CLASSES, K), jnp.float32, -bound, bound)
    b_cls = jax.random.uniform(k_bc, (NUM_CLASSES,), jnp.float32, -bound, bound)

    # Weight packing happens once, outside the per-call hot path.
    w_packed, b_packed = pack_discrim_weights(w_dense, b_dense, w_cls, b_cls)

    fake, img_class = discrim_rgb_forward(x_flat, w_packed, b_packed)
    jax.block_until_ready((fake, img_class))

    # Plain-JAX reference check.
    ref_fake = 1.0 / (1.0 + jnp.exp(-(x_flat @ w_dense.T + b_dense)))
    ref_cls = x_flat @ w_cls.T + b_cls
    assert fake.shape == (N, 1) and img_class.shape == (N, NUM_CLASSES)
    assert jnp.allclose(fake, ref_fake, atol=1e-5)
    assert jnp.allclose(img_class, ref_cls, atol=1e-5)

    print("KERNEL_OK")
</pallas_src>

<mosaic_0001>
module attributes {stable_mosaic.version = 11 : i64} {
  func.func @_discrim_head_kernel(%arg0: i32, %arg1: memref<2x4096xf32, #tpu.memory_space<vmem>>, %arg2: memref<11x4096xf32, #tpu.memory_space<vmem>>, %arg3: memref<1x11xf32, #tpu.memory_space<vmem>>, %arg4: memref<2x11xf32, #tpu.memory_space<vmem>>) attributes {dimension_semantics = [#tpu.dimension_semantics<arbitrary>], iteration_bounds = array<i64: 1>, scalar_prefetch = 0 : i64, scratch_operands = 0 : i64, tpu.core_type = #tpu.core_type<tc>, window_params = [{pipeline_mode = #tpu.pipeline_mode<synchronous>, transform_indices = @transform_0, window_bounds = array<i64: 2, 4096>}, {pipeline_mode = #tpu.pipeline_mode<synchronous>, transform_indices = @transform_1, window_bounds = array<i64: 11, 4096>}, {pipeline_mode = #tpu.pipeline_mode<synchronous>, transform_indices = @transform_2, window_bounds = array<i64: 1, 11>}, {pipeline_mode = #tpu.pipeline_mode<synchronous>, transform_indices = @transform_3, window_bounds = array<i64: 2, 11>}]} {
    %c0 = arith.constant 0 : index
    %c0_0 = arith.constant 0 : index
    %0 = vector.load %arg1[%c0, %c0_0] : memref<2x4096xf32, #tpu.memory_space<vmem>>, vector<2x4096xf32>
    %c0_1 = arith.constant 0 : index
    %c0_2 = arith.constant 0 : index
    %1 = vector.load %arg2[%c0_1, %c0_2] : memref<11x4096xf32, #tpu.memory_space<vmem>>, vector<11x4096xf32>
    %2 = vector.shape_cast %0 : vector<2x4096xf32> to vector<2x1x4096xf32>
    %3 = vector.shape_cast %1 : vector<11x4096xf32> to vector<1x11x4096xf32>
    %4 = vector.broadcast %2 : vector<2x1x4096xf32> to vector<2x11x4096xf32>
    %5 = vector.broadcast %3 : vector<1x11x4096xf32> to vector<2x11x4096xf32>
    %6 = arith.mulf %4, %5 : vector<2x11x4096xf32>
    %cst = arith.constant dense<0.000000e+00> : vector<2x11xf32>
    %7 = vector.multi_reduction <add>, %6, %cst [2] : vector<2x11x4096xf32> to vector<2x11xf32>
    %c0_3 = arith.constant 0 : index
    %c0_4 = arith.constant 0 : index
    %8 = vector.load %arg3[%c0_3, %c0_4] : memref<1x11xf32, #tpu.memory_space<vmem>>, vector<1x11xf32>
    %9 = vector.broadcast %8 : vector<1x11xf32> to vector<2x11xf32>
    %10 = arith.addf %7, %9 : vector<2x11xf32>
    %11 = tpu.iota {dimensions = array<i32: 1>} : vector<2x11xi32>
    %cst_5 = arith.constant 0.000000e+00 : f32
    %12 = vector.broadcast %cst_5 : f32 to vector<2x11xf32>
    %13 = arith.subf %12, %10 : vector<2x11xf32>
    %14 = math.exp %13 : vector<2x11xf32>
    %cst_6 = arith.constant 1.000000e+00 : f32
    %15 = vector.broadcast %cst_6 : f32 to vector<2x11xf32>
    %16 = arith.addf %15, %14 : vector<2x11xf32>
    %cst_7 = arith.constant 1.000000e+00 : f32
    %17 = vector.broadcast %cst_7 : f32 to vector<2x11xf32>
    %18 = arith.divf %17, %16 : vector<2x11xf32>
    %c0_i32 = arith.constant 0 : i32
    %19 = vector.broadcast %c0_i32 : i32 to vector<2x11xi32>
    %20 = arith.cmpi eq, %11, %19 : vector<2x11xi32>
    %21 = arith.select %20, %18, %10 : vector<2x11xi1>, vector<2x11xf32>
    %c0_8 = arith.constant 0 : index
    %c0_9 = arith.constant 0 : index
    %22 = vector.load %arg4[%c0_8, %c0_9] : memref<2x11xf32, #tpu.memory_space<vmem>>, vector<2x11xf32>
    tpu.vector_store %arg4[%c0_8, %c0_9], %21 {strides = array<i32>} : memref<2x11xf32, #tpu.memory_space<vmem>>, vector<2x11xf32>,
    return
  }
  func.func @transform_0(%arg0: i32) -> (i32, i32) {
    %c0_i32 = arith.constant 0 : i32
    %c0_i32_0 = arith.constant 0 : i32
    %c0_i32_1 = arith.constant 0 : i32
    return %c0_i32, %c0_i32_0 : i32, i32
  }
  func.func @transform_1(%arg0: i32) -> (i32, i32) {
    %c0_i32 = arith.constant 0 : i32
    %c0_i32_0 = arith.constant 0 : i32
    %c0_i32_1 = arith.constant 0 : i32
    return %c0_i32, %c0_i32_0 : i32, i32
  }
  func.func @transform_2(%arg0: i32) -> (i32, i32) {
    %c0_i32 = arith.constant 0 : i32
    %c0_i32_0 = arith.constant 0 : i32
    %c0_i32_1 = arith.constant 0 : i32
    return %c0_i32, %c0_i32_0 : i32, i32
  }
  func.func @transform_3(%arg0: i32) -> (i32, i32) {
    %c0_i32 = arith.constant 0 : i32
    %c0_i32_0 = arith.constant 0 : i32
    %c0_i32_1 = arith.constant 0 : i32
    return %c0_i32, %c0_i32_0 : i32, i32
  }
}

</mosaic_0001>

<bundles_post_ra>
// kernel: tpu_custom_call.1
= control target key start
LH: loop header
LB: loop body
LE: loop exit
PB: predicated region body
PF: predicated region fallthrough
CT: control target
= control target key end

     0   :  { %8 = vsyncpa [#allocation3], 0  ;;  %s1856_s0 = inlined_call_operand.hbm [shape: f32[2,4096], index: 0, kind: input, shape index: {}]   ;;  %s1857_s1 = inlined_call_operand.hbm [shape: f32[11,4096], index: 1, kind: input, shape index: {}]   ;;  %s1858_s2 = inlined_call_operand.vmem [shape: f32[1,11], index: 2, kind: input, shape index: {}]   ;;  %s1859_s3 = inlined_call_operand.hbm [shape: f32[2,11], index: 3, kind: output, shape index: {}]  }
   0x1   :  { %9 = vsyncpa [#allocation6], 0 }
   0x2   :  { %10 = vsyncpa [#allocation4], 0  ;;  %s16_s14 = sshll.u32 %s1856_s0, 4  ;;  %s957_s15 = smov [#allocation2]   ;;  %s17_s14 = int_to_ptr.hbm [resolvable:$true] %s16_s14 }
   0x3   :  { %s18_s16 = sshll.u32 %s957_s15, 4  ;;  %s26_s19 = sshll.u32 %s1857_s1, 4  ;;  %s19_s16 = int_to_ptr.vmem [resolvable:$true] %s18_s16  ;;  %s27_s19 = int_to_ptr.hbm [resolvable:$true] %s26_s19 }
   0x4   :  { %21 = dma.hbm_to_vmem [thread:$0]  %s17_s14, 1024, %s19_s16, [#allocation3]  }
   0x5   :  { %s958_s20 = smov [#allocation5]   ;;  %s959_s22 = smov 4096  }
   0x6   :  { %s28_s21 = sshll.u32 %s958_s20, 4  ;;  %s960_s23 = smov 256   ;;  %s29_s21 = int_to_ptr.vmem [resolvable:$true] %s28_s21 }
   0x7   :  { %34 = dma.hbm_to_vmem [thread:$0]  %s27_s19, 8192, %s29_s21, [#allocation6], %s959_s22, %s959_s22, %s960_s23  }
   0x8   :  { %951 = dma.done.wait [#allocation3], 1024  }
   0x9   :  { %952 = vsyncadd [#allocation3], 4294966272 }
   0xa   :  { %953 = dma.done.wait [#allocation6], 8192  }
   0xb   :  { %954 = vsyncadd [#allocation6], 4294959104  ;;  %v989_v0 = vld [vmem:[#allocation2] sm:$0xff]  ;;  %v991_v1 = vld [vmem:[#allocation2 + $0x8] sm:$0xff]  ;;  %vm153_vm0 = vcmask 1040384   ;;  %vm155_vm1 = vcmask 1042434  }
   0xc   :  { %v993_v2 = vld [vmem:[#allocation2 + $0x10] sm:$0xff]  ;;  %v125_v3 = vrot.slane %v989_v0, 1  ;;  %v996_v4 = vld [vmem:[#allocation2 + $0x18] sm:$0xff]  ;;  %v126_v5 = vrot.slane %v989_v0, 2  ;;  %v127_v6 = vrot.slane %v989_v0, 3  ;;  %v128_v7 = vrot.slane %v991_v1, 4 }
   0xd   :  { %vm157_vm2 = vcmask 1041408   ;;  %vm159_vm3 = vcmask 1044484   ;;  %vm161_vm4 = vcmask 1046534   ;;  %vm163_vm5 = vcmask 1045508   ;;  %v1001_v8 = vld [vmem:[#allocation2 + $0x20] sm:$0xff]  ;;  %v1003_v9 = vld [vmem:[#allocation2 + $0x28] sm:$0xff] }
   0xe   :  { %v129_v10 = vrot.slane %v991_v1, 5  ;;  %v130_v11 = vrot.slane %v991_v1, 6  ;;  %v131_v12 = vrot.slane %v991_v1, 7  ;;  %v132_v13 = vrot.slane %v993_v2, 1  ;;  %v1016_v18 = vld [vmem:[#allocation2 + $0x30] sm:$0xff]  ;;  %v1026_v23 = vld [vmem:[#allocation2 + $0x38] sm:$0xff] }
   0xf   :  { %v133_v14 = vrot.slane %v993_v2, 2  ;;  %v134_v15 = vrot.slane %v993_v2, 3  ;;  %v135_v16 = vrot.slane %v996_v4, 4  ;;  %v154_v17 = vsel %vm153_vm0, %v989_v0, %v125_v3  ;;  %s840_s27 = sshll.u32 %s1859_s3, 4  ;;  %s841_s27 = int_to_ptr.hbm [resolvable:$true] %s840_s27 }
  0x10   :  { %v136_v19 = vrot.slane %v996_v4, 5  ;;  %v137_v20 = vrot.slane %v996_v4, 6  ;;  %v138_v21 = vrot.slane %v996_v4, 7  ;;  %v156_v22 = vsel %vm155_vm1, %v126_v5, %v127_v6 }
  0x11   :  { %v139_v24 = vrot.slane %v1001_v8, 1  ;;  %v140_v25 = vrot.slane %v1001_v8, 2  ;;  %v141_v26 = vrot.slane %v1001_v8, 3  ;;  %v142_v27 = vrot.slane %v1003_v9, 4 }
  0x12   :  { %v143_v28 = vrot.slane %v1003_v9, 5  ;;  %v144_v29 = vrot.slane %v1003_v9, 6  ;;  %v145_v30 = vrot.slane %v1003_v9, 7  ;;  %v160_v31 = vsel %vm159_vm3, %v128_v7, %v129_v10 }
  0x13   :  { %v146_v32 = vrot.slane %v1016_v18, 1  ;;  %v147_v33 = vrot.slane %v1016_v18, 2  ;;  %v148_v34 = vrot.slane %v1016_v18, 3  ;;  %v162_v35 = vsel %vm161_vm4, %v130_v11, %v131_v12 }
  0x14   :  { %v149_v36 = vrot.slane %v1026_v23, 4  ;;  %v150_v37 = vrot.slane %v1026_v23, 5  ;;  %v151_v38 = vrot.slane %v1026_v23, 6  ;;  %v152_v39 = vrot.slane %v1026_v23, 7 }
  0x15   :  { %v167_v40 = vsel %vm153_vm0, %v993_v2, %v132_v13  ;;  %v168_v41 = vsel %vm155_vm1, %v133_v14, %v134_v15  ;;  %v170_v42 = vsel %vm159_vm3, %v135_v16, %v136_v19  ;;  %v171_v43 = vsel %vm161_vm4, %v137_v20, %v138_v21 }
  0x16   :  { %v174_v44 = vsel %vm153_vm0, %v1001_v8, %v139_v24  ;;  %v175_v45 = vsel %vm155_vm1, %v140_v25, %v141_v26  ;;  %v177_v46 = vsel %vm159_vm3, %v142_v27, %v143_v28  ;;  %v178_v47 = vsel %vm161_vm4, %v144_v29, %v145_v30 }
  0x17   :  { %v158_v48 = vsel %vm157_vm2, %v154_v17, %v156_v22  ;;  %v164_v49 = vsel %vm163_vm5, %v160_v31, %v162_v35  ;;  %vm165_vm6 = vcmask 1043456   ;;  %v169_v50 = vsel %vm157_vm2, %v167_v40, %v168_v41 }
  0x18   :  { %v172_v51 = vsel %vm163_vm5, %v170_v42, %v171_v43  ;;  %v176_v52 = vsel %vm157_vm2, %v174_v44, %v175_v45  ;;  %v179_v53 = vsel %vm163_vm5, %v177_v46, %v178_v47  ;;  %v181_v54 = vsel %vm153_vm0, %v1016_v18, %v146_v32  ;;  %v1166_v42 = vld [vmem:[#allocation5 + $0x18] sm:$0xff] }
  0x19   :  { %v182_v55 = vsel %vm155_vm1, %v147_v33, %v148_v34  ;;  %v184_v56 = vsel %vm159_vm3, %v149_v36, %v150_v37  ;;  %v185_v57 = vsel %vm161_vm4, %v151_v38, %v152_v39  ;;  %vm188_vm7 = vcmask 1041409  }
  0x1a   :  { %vm190_vm8 = vcmask 1043459   ;;  %vm194_vm9 = vcmask 1045509   ;;  %vm196_vm10 = vcmask 1046528   ;;  %v1072_v58 = vsel %vm165_vm6, %v158_v48, %v164_v49 }
  0x1b   :  { %vm192_vm11 = vcmask 1042433   ;;  %vm198_vm12 = vcmask 1046533   ;;  %v1075_v59 = vsel %vm165_vm6, %v169_v50, %v172_v51  ;;  %v1078_v60 = vsel %vm165_vm6, %v176_v52, %v179_v53  ;;  %v1176_v51 = vld [vmem:[#allocation5 + $0x20] sm:$0xff] }
  0x1c   :  { %v183_v61 = vsel %vm157_vm2, %v181_v54, %v182_v55  ;;  %v186_v62 = vsel %vm163_vm5, %v184_v56, %v185_v57  ;;  %v189_v63 = vsel %vm188_vm7, %v989_v0, %v125_v3  ;;  %v191_v4 = vsel %vm190_vm8, %v126_v5, %v127_v6  ;;  %v1178_v52 = vld [vmem:[#allocation5 + $0x120] sm:$0x7] }
  0x1d   :  { %v195_v9 = vsel %vm194_vm9, %v128_v7, %v129_v10  ;;  %v197_v17 = vsel %vm196_vm10, %v131_v12, %v130_v11  ;;  %v203_v22 = vsel %vm188_vm7, %v993_v2, %v132_v13  ;;  %v204_v3 = vsel %vm190_vm8, %v133_v14, %v134_v15  ;;  %1905 = vst [vmem:[#allocation15_spill] sm:$0xff] %v1178_v52 }
  0x1e   :  { %v206_v23 = vsel %vm194_vm9, %v135_v16, %v136_v19  ;;  %v207_v0 = vsel %vm196_vm10, %v138_v21, %v137_v20  ;;  %v211_v5 = vsel %vm188_vm7, %v1001_v8, %v139_v24  ;;  %v212_v6 = vsel %vm190_vm8, %v140_v25, %v141_v26  ;;  %v1122_v16 = vld [vmem:[#allocation5] sm:$0xff]  ;;  %v1124_v19 = vld [vmem:[#allocation5 + $0x8] sm:$0xff]  ;;  %v1138_v25 = vld [vmem:[#allocation5 + $0x10] sm:$0xff] }
  0x1f   :  { %v214_v7 = vsel %vm194_vm9, %v142_v27, %v143_v28  ;;  %v215_v1 = vsel %vm196_vm10, %v145_v30, %v144_v29  ;;  %v219_v10 = vsel %vm188_vm7, %v1016_v18, %v146_v32  ;;  %v220_v2 = vsel %vm190_vm8, %v147_v33, %v148_v34  ;;  %v1140_v26 = vld [vmem:[#allocation5 + $0x100] sm:$0x7]  ;;  %v1142_v27 = vld [vmem:[#allocation5 + $0x108] sm:$0x7]  ;;  %v1154_v32 = vld [vmem:[#allocation5 + $0x110] sm:$0x7] }
  0x20   :  { %v222_v11 = vsel %vm194_vm9, %v149_v36, %v150_v37  ;;  %v223_v12 = vsel %vm196_vm10, %v152_v39, %v151_v38  ;;  %v1115_v13 = vsel %vm165_vm6, %v183_v61, %v186_v62  ;;  %v1118_v8 = vsel %vm192_vm11, %v189_v63, %v191_v4  ;;  %1901 = vst [vmem:[#allocation11_spill] sm:$0xff] %v1140_v26  ;;  %v1160_v37 = vld [vmem:[#allocation5 + $0x118] sm:$0x7]  ;;  %v1186_v63 = vld [vmem:[#allocation5 + $0x28] sm:$0xff] }
  0x21   :  { %v227_v14 = vperm.slane %v1072_v58, 0  ;;  %v228_v15 = vperm.slane %v1072_v58, 1  ;;  %v1127_v18 = vsel %vm198_vm12, %v195_v9, %v197_v17  ;;  %v1130_v20 = vsel %vm192_vm11, %v203_v22, %v204_v3  ;;  %1902 = vst [vmem:[#allocation12_spill] sm:$0xff] %v1142_v27  ;;  %v1192_v3 = vld [vmem:[#allocation5 + $0x30] sm:$0xff] }
  0x22   :  { %v1133_v21 = vsel %vm198_vm12, %v206_v23, %v207_v0  ;;  %v1136_v24 = vsel %vm192_vm11, %v211_v5, %v212_v6  ;;  %v1145_v28 = vsel %vm198_vm12, %v214_v7, %v215_v1  ;;  %v1148_v29 = vsel %vm192_vm11, %v219_v10, %v220_v2  ;;  %1903 = vst [vmem:[#allocation13_spill] sm:$0xff] %v1154_v32  ;;  %v1194_v23 = vld [vmem:[#allocation5 + $0x128] sm:$0x7] }
  0x23   :  { %v1151_v30 = vsel %vm198_vm12, %v222_v11, %v223_v12  ;;  %v229_v31 = vperm.slane %v1072_v58, 2  ;;  %v230_v33 = vperm.slane %v1072_v58, 3  ;;  %v231_v34 = vperm.slane %v1072_v58, 4  ;;  %1904 = vst [vmem:[#allocation14_spill] sm:$0xff] %v1160_v37  ;;  %v1290_v11 = vld [vmem:[#allocation5 + $0xb0] sm:$0xff] }
  0x24   :  { %v232_v35 = vperm.slane %v1072_v58, 5  ;;  %v233_v36 = vperm.slane %v1072_v58, 6  ;;  %v234_v38 = vperm.slane %v1072_v58, 7  ;;  %v1863_v39 = vperm.slane %v1075_v59, 0  ;;  %1906 = vst [vmem:[#allocation16_spill] sm:$0xff] %v1194_v23 }
  0x25   :  { %v355_v40 = vmul.f32 %v227_v14, %v1122_v16  ;;  %v356_v41 = vmul.f32 %v228_v15, %v1124_v19  ;;  %v1862_v43 = vperm.slane %v1075_v59, 1  ;;  %v1860_v44 = vperm.slane %v1075_v59, 2  ;;  %1911 = vst [vmem:[#allocation21_spill] sm:$0xff] %v1290_v11 }
  0x26   :  { %v387_v45 = vmul.f32 %v227_v14, %v1140_v26  ;;  %v388_v46 = vmul.f32 %v228_v15, %v1142_v27  ;;  %v1861_v47 = vperm.slane %v1075_v59, 3  ;;  %v1864_v48 = vperm.slane %v1075_v59, 4  ;;  %v1367_v27 = vld [vmem:[#allocation5 + $0x148] sm:$0x7] }
  0x27   :  { %v357_v49 = vmul.f32 %v229_v31, %v1138_v25  ;;  %v389_v50 = vmul.f32 %v229_v31, %v1154_v32  ;;  %v1865_v53 = vperm.slane %v1075_v59, 5  ;;  %v1866_v54 = vperm.slane %v1075_v59, 6  ;;  %v1203_v31 = vld [vmem:[#allocation5 + $0x38] sm:$0xff] }
  0x28   :  { %v1868_v55 = vperm.slane %v1075_v59, 7  ;;  %v390_v56 = vmul.f32 %v230_v33, %v1160_v37  ;;  %v1869_v57 = vperm.slane %v1078_v60, 0  ;;  %v358_v61 = vmul.f32 %v230_v33, %v1166_v42  ;;  %v1253_v33 = vld [vmem:[#allocation5 + $0x80] sm:$0xff]  ;;  %v1349_v37 = vld [vmem:[#allocation5 + $0xd8] sm:$0xff] }
  0x29   :  { %v483_v62 = vadd.f32 %v356_v41, %v355_v40  ;;  %vm516_vm13 = vcmask 1042432   ;;  %v359_v0 = vmul.f32 %v231_v34, %v1176_v51  ;;  %v391_v5 = vmul.f32 %v231_v34, %v1178_v52  ;;  %v1347_v52 = vld [vmem:[#allocation5 + $0xd0] sm:$0xff]  ;;  %1923 = vst [vmem:[#allocation27_spill] sm:$0xff] %v1349_v37 }
  0x2a   :  { %v517_v9 = vsel %vm516_vm13, %v387_v45, 0.0  ;;  %v518_v17 = vsel %vm516_vm13, %v388_v46, 0.0  ;;  %v520_v22 = vsel %vm516_vm13, %v389_v50, 0.0  ;;  %v522_v2 = vsel %vm516_vm13, %v390_v56, 0.0  ;;  %v1211_v45 = vld [vmem:[#allocation5 + $0x40] sm:$0xff]  ;;  %1922 = vst [vmem:[#allocation26_spill] sm:$0xff] %v1347_v52 }
  0x2b   :  { %v484_v6 = vadd.f32 %v483_v62, %v357_v49  ;;  %v519_v7 = vadd.f32 %v518_v17, %v517_v9  ;;  %vm200_vm14 = vcmask 1044481   ;;  %v360_v12 = vmul.f32 %v232_v35, %v1186_v63 }
  0x2c   :  { %v361_v40 = vmul.f32 %v233_v36, %v1192_v3  ;;  %v392_v41 = vmul.f32 %v232_v35, %v1194_v23  ;;  %v524_v50 = vsel %vm516_vm13, %v391_v5, 0.0  ;;  %v201_v56 = vsel %vm200_vm14, %v1118_v8, %v1127_v18  ;;  %v1244_v5 = vld [vmem:[#allocation5 + $0x78] sm:$0xff] }
  0x2d   :  { %v485_v14 = vadd.f32 %v484_v6, %v358_v61  ;;  %v521_v15 = vadd.f32 %v520_v22, %v519_v7  ;;  %v1217_v61 = vld [vmem:[#allocation5 + $0x130] sm:$0x7]  ;;  %v1223_v22 = vld [vmem:[#allocation5 + $0x48] sm:$0xff]  ;;  %v1227_v6 = vld [vmem:[#allocation5 + $0x58] sm:$0xff]  ;;  %v362_v18 = vmul.f32 %v234_v38, %v1203_v31  ;;  %v1242_v62 = vrot.slane %v201_v56, 1 }
  0x2e   :  { %1907 = vst [vmem:[#allocation17_spill] sm:$0xff] %v1217_v61  ;;  %v363_v8 = vmul.f32 %v1863_v39, %v1211_v45  ;;  %v526_v34 = vsel %vm516_vm13, %v392_v41, 0.0  ;;  %v1255_v35 = vld [vmem:[#allocation5 + $0x138] sm:$0x7]  ;;  %v1269_v41 = vld [vmem:[#allocation5 + $0x90] sm:$0xff]  ;;  %v1288_v39 = vld [vmem:[#allocation5 + $0xa8] sm:$0xff] }
  0x2f   :  { %v486_v46 = vadd.f32 %v485_v14, %v359_v0  ;;  %v523_v49 = vadd.f32 %v522_v2, %v521_v15  ;;  %v1225_v0 = vld [vmem:[#allocation5 + $0x50] sm:$0xff]  ;;  %v1234_v2 = vld [vmem:[#allocation5 + $0x60] sm:$0xff]  ;;  %v1236_v14 = vld [vmem:[#allocation5 + $0x68] sm:$0xff]  ;;  %1908 = vst [vmem:[#allocation18_spill] sm:$0xff] %v1255_v35  ;;  %v1916_v58 = vperm.slane %v1078_v60, 3 }
  0x30   :  { %v1238_v15 = vld [vmem:[#allocation5 + $0x70] sm:$0xff]  ;;  %v365_v56 = vmul.f32 %v1860_v44, %v1225_v0  ;;  %v1279_v17 = vmul.f32 %v1865_v53, %v1236_v14  ;;  %1910 = vst [vmem:[#allocation20_spill] sm:$0xff] %v1288_v39 }
  0x31   :  { %v487_v7 = vadd.f32 %v486_v46, %v360_v12  ;;  %v525_v9 = vadd.f32 %v524_v50, %v523_v49  ;;  %v393_v12 = vmul.f32 %v233_v36, %v1217_v61  ;;  %v364_v50 = vmul.f32 %v1862_v43, %v1223_v22  ;;  %v1286_v43 = vld [vmem:[#allocation5 + $0xa0] sm:$0xff]  ;;  %v1308_v61 = vld [vmem:[#allocation5 + $0xb8] sm:$0xff] }
  0x32   :  { %v366_v36 = vmul.f32 %v1861_v47, %v1227_v6  ;;  %v367_v49 = vmul.f32 %v1864_v48, %v1234_v2  ;;  %v1284_v44 = vmul.f32 %v1866_v54, %v1238_v15  ;;  %1909 = vst [vmem:[#allocation19_spill] sm:$0xff] %v1286_v43  ;;  %v1295_v48 = vmul.f32 %v1868_v55, %v1244_v5  ;;  %v1310_v55 = vld [vmem:[#allocation5 + $0x140] sm:$0x7] }
  0x33   :  { %v488_v46 = vadd.f32 %v487_v7, %v361_v40  ;;  %v1267_v40 = vld [vmem:[#allocation5 + $0x88] sm:$0xff]  ;;  %v1271_v7 = vld [vmem:[#allocation5 + $0x98] sm:$0xff]  ;;  %v527_v10 = vadd.f32 %v526_v34, %v525_v9  ;;  %v528_v4 = vsel %vm516_vm13, %v393_v12, 0.0  ;;  %1912 = vst [vmem:[#allocation22_spill] sm:$0xff] %v1308_v61  ;;  %v1914_v34 = vperm.slane %v1078_v60, 1 }
  0x34   :  { %1913 = vst [vmem:[#allocation23_spill] sm:$0xff] %v1310_v55  ;;  %v1330_v12 = vld [vmem:[#allocation5 + $0xc8] sm:$0xff] }
  0x35   :  { %v489_v47 = vadd.f32 %v488_v46, %v362_v18  ;;  %v1302_v18 = vmul.f32 %v1869_v57, %v1253_v33  ;;  %v394_v46 = vmul.f32 %v234_v38, %v1255_v35  ;;  %v1315_v9 = vmul.f32 %v1914_v34, %v1267_v40  ;;  %1918 = vst [vmem:[#allocation25_spill] sm:$0xff] %v1330_v12 }
  0x36   :  { %v1915_v57 = vperm.slane %v1078_v60, 2  ;;  %v1325_v38 = vmul.f32 %v1916_v58, %v1271_v7  ;;  %v1919_v34 = vperm.slane %v1078_v60, 4  ;;  %v1921_v58 = vperm.slane %v1078_v60, 6 }
  0x37   :  { %v490_v54 = vadd.f32 %v489_v47, %v363_v8  ;;  %v1328_v8 = vld [vmem:[#allocation5 + $0xc0] sm:$0xff]  ;;  %v529_v32 = vadd.f32 %v528_v4, %v527_v10  ;;  %v530_v10 = vsel %vm516_vm13, %v394_v46, 0.0 }
  0x38   :  { %v1320_v1 = vmul.f32 %v1915_v57, %v1269_v41  ;;  %1917 = vst [vmem:[#allocation24_spill] sm:$0xff] %v1328_v8  ;;  %v1335_v53 = vmul.f32 %v1919_v34, %v1286_v43  ;;  %v1920_v57 = vperm.slane %v1078_v60, 5  ;;  %v1345_v23 = vmul.f32 %v1921_v58, %v1290_v11  ;;  %v1369_v43 = vld [vmem:[#allocation5 + $0x150] sm:$0x7] }
  0x39   :  { %v491_v47 = vadd.f32 %v490_v54, %v364_v50  ;;  %v1924_v34 = vperm.slane %v1242_v62, 0  ;;  %v1926_v58 = vperm.slane %v1078_v60, 7  ;;  %v1927_v54 = vperm.slane %v1075_v59, 0 }
  0x3a   :  { %v1340_v35 = vmul.f32 %v1920_v57, %v1288_v39  ;;  %v1925_v57 = vperm.slane %v1242_v62, 1 }
  0x3b   :  { %v419_v26 = vmul.f32 %v1924_v34, %v1122_v16  ;;  %v1361_v11 = vmul.f32 %v1926_v58, %v1308_v61  ;;  %v395_v50 = vmul.f32 %v1927_v54, %v1310_v55  ;;  %v492_v4 = vadd.f32 %v491_v47, %v365_v56  ;;  %v1398_v58 = vld [vmem:[#allocation5 + $0xe0] sm:$0xff] }
  0x3c   :  { %v420_v39 = vmul.f32 %v1925_v57, %v1124_v19  ;;  %v1928_v16 = vperm.slane %v1115_v13, 0  ;;  %v1929_v34 = vperm.slane %v1115_v13, 1  ;;  %v1930_v56 = vperm.slane %v1242_v62, 2 }
  0x3d   :  { %v1931_v47 = vperm.slane %v1115_v13, 2 }
  0x3e   :  { %v1374_v19 = vmul.f32 %v1928_v16, %v1328_v8  ;;  %v1379_v57 = vmul.f32 %v1929_v34, %v1330_v12  ;;  %v421_v46 = vmul.f32 %v1930_v56, %v1138_v25  ;;  %v1932_v16 = vperm.slane %v1115_v13, 3  ;;  %v1400_v12 = vld [vmem:[#allocation5 + $0xe8] sm:$0xff] }
  0x3f   :  { %v1388_v54 = vmul.f32 %v1931_v47, %v1347_v52  ;;  %v493_v8 = vadd.f32 %v492_v4, %v366_v36  ;;  %v209_v34 = vsel %vm200_vm14, %v1130_v20, %v1133_v21  ;;  %1934 = vst [vmem:[#allocation29_spill] sm:$0xff] %v1400_v12  ;;  %v531_v25 = vadd.f32 %v530_v10, %v529_v32 }
  0x40   :  { %v1393_v55 = vmul.f32 %v1932_v16, %v1349_v37  ;;  %v1887_v56 = vperm.slane %v1242_v62, 5  ;;  %v1935_v47 = vperm.slane %v1242_v62, 3  ;;  %v582_v61 = vadd.f32 %v420_v39, %v419_v26  ;;  %v1419_v39 = vld [vmem:[#allocation5 + $0x158] sm:$0x7] }
  0x41   :  { %v1936_v16 = vperm.slane %v1075_v59, 1  ;;  %v1937_v4 = vperm.slane %v1075_v59, 2  ;;  %v494_v21 = vadd.f32 %v493_v8, %v367_v49  ;;  %v532_v37 = vsel %vm516_vm13, %v395_v50, 0.0 }
  0x42   :  { %1933 = vst [vmem:[#allocation28_spill] sm:$0xff] %v1393_v55  ;;  %v422_v52 = vmul.f32 %v1935_v47, %v1166_v42  ;;  %v1413_v55 = vrot.slane %v209_v34, 1  ;;  %v1938_v10 = vperm.slane %v1242_v62, 4  ;;  %v583_v26 = vadd.f32 %v582_v61, %v421_v46  ;;  %v1437_v61 = vld [vmem:[#allocation5 + $0xf8] sm:$0xff] }
  0x43   :  { %v396_v36 = vmul.f32 %v1936_v16, %v1367_v27  ;;  %v397_v20 = vmul.f32 %v1937_v4, %v1369_v43  ;;  %v1939_v47 = vperm.slane %v1115_v13, 4  ;;  %v1940_v49 = vperm.slane %v1115_v13, 5 }
  0x44   :  { %v423_v42 = vmul.f32 %v1938_v10, %v1176_v51  ;;  %v495_v50 = vadd.f32 %v494_v21, %v1279_v17  ;;  %v217_v34 = vsel %vm200_vm14, %v1136_v24, %v1145_v28  ;;  %v1435_v51 = vld [vmem:[#allocation5 + $0xf0] sm:$0xff]  ;;  %v424_v4 = vmul.f32 %v1887_v56, %v1186_v63 }
  0x45   :  { %v1424_v16 = vmul.f32 %v1939_v47, %v1398_v58  ;;  %v1429_v8 = vmul.f32 %v1940_v49, %v1400_v12  ;;  %v584_v10 = vadd.f32 %v583_v26, %v422_v52  ;;  %v1443_v47 = vld [vmem:[#allocation5 + $0x160] sm:$0x7]  ;;  %v533_v49 = vadd.f32 %v532_v37, %v531_v25  ;;  %v1455_v26 = vld [vmem:[#allocation5 + $0x168] sm:$0x7] }
  0x46   :  { %v496_v17 = vadd.f32 %v495_v50, %v1284_v44  ;;  %v1941_v21 = vperm.slane %v1075_v59, 3  ;;  %v534_v28 = vsel %vm516_vm13, %v396_v36, 0.0  ;;  %v536_v32 = vsel %vm516_vm13, %v397_v20, 0.0 }
  0x47   :  { %v1942_v12 = vperm.slane %v1242_v62, 6  ;;  %v585_v52 = vadd.f32 %v584_v10, %v423_v42  ;;  %v535_v37 = vadd.f32 %v534_v28, %v533_v49  ;;  %v1943_v44 = vperm.slane %v1115_v13, 6  ;;  %v1475_v28 = vld [vmem:[#allocation5 + $0x170] sm:$0x7] }
  0x48   :  { %v398_v24 = vmul.f32 %v1941_v21, %v1419_v39  ;;  %v1944_v36 = vperm.slane %v1115_v13, 7  ;;  %v497_v20 = vadd.f32 %v496_v17, %v1295_v48  ;;  %v1945_v21 = vperm.slane %v1075_v59, 4 }
  0x49   :  { %v425_v63 = vmul.f32 %v1942_v12, %v1192_v3  ;;  %v1460_v25 = vmul.f32 %v1943_v44, %v1435_v51  ;;  %v1946_v42 = vperm.slane %v1242_v62, 7  ;;  %v586_v49 = vadd.f32 %v585_v52, %v424_v4 }
  0x4a   :  { %v1465_v50 = vmul.f32 %v1944_v36, %v1437_v61  ;;  %v399_v3 = vmul.f32 %v1945_v21, %v1443_v47  ;;  %v537_v44 = vadd.f32 %v536_v32, %v535_v37  ;;  %v498_v56 = vadd.f32 %v497_v20, %v1302_v18  ;;  %v1489_v32 = vld [vmem:[#allocation5 + $0x178] sm:$0x7] }
  0x4b   :  { %v426_v10 = vmul.f32 %v1946_v42, %v1203_v31  ;;  %v1478_v36 = vrot.slane %v217_v34, 1  ;;  %v1947_v48 = vperm.slane %v1075_v59, 5  ;;  %v538_v21 = vsel %vm516_vm13, %v398_v24, 0.0 }
  0x4c   :  { %v1888_v12 = vperm.slane %v1413_v55, 2  ;;  %v1948_v31 = vperm.slane %v1413_v55, 0  ;;  %v587_v52 = vadd.f32 %v586_v49, %v425_v63  ;;  %v499_v18 = vadd.f32 %v498_v56, %v1315_v9  ;;  %v1501_v63 = vld [vmem:[#allocation5 + $0x180] sm:$0x7] }
  0x4d   :  { %v400_v17 = vmul.f32 %v1947_v48, %v1455_v26  ;;  %v1889_v34 = vperm.slane %v1413_v55, 4  ;;  %v1949_v37 = vperm.slane %v1075_v59, 6  ;;  %v540_v24 = vsel %vm516_vm13, %v399_v3, 0.0 }
  0x4e   :  { %v427_v4 = vmul.f32 %v1948_v31, %v1211_v45  ;;  %v1950_v48 = vperm.slane %v1413_v55, 1  ;;  %v588_v45 = vadd.f32 %v587_v52, %v426_v10  ;;  %v539_v49 = vadd.f32 %v538_v21, %v537_v44  ;;  %v1513_v52 = vld [vmem:[#allocation5 + $0x188] sm:$0x7] }
  0x4f   :  { %v401_v20 = vmul.f32 %v1949_v37, %v1475_v28  ;;  %v500_v9 = vadd.f32 %v499_v18, %v1320_v1  ;;  %v1900_v56 = vperm.slane %v1413_v55, 6  ;;  %v1951_v31 = vperm.slane %v1075_v59, 7 }
  0x50   :  { %v428_v46 = vmul.f32 %v1950_v48, %v1223_v22  ;;  %v542_v3 = vsel %vm516_vm13, %v400_v17, 0.0  ;;  %v1899_v42 = vperm.slane %v1413_v55, 7  ;;  %v429_v22 = vmul.f32 %v1888_v12, %v1225_v0 }
  0x51   :  { %v402_v37 = vmul.f32 %v1951_v31, %v1489_v32  ;;  %v589_v10 = vadd.f32 %v588_v45, %v427_v4  ;;  %v541_v44 = vadd.f32 %v540_v24, %v539_v49  ;;  %v501_v1 = vadd.f32 %v500_v9, %v1325_v38  ;;  %v1525_v45 = vld [vmem:[#allocation5 + $0x190] sm:$0x7] }
  0x52   :  { %v1898_v21 = vperm.slane %v1478_v36, 0  ;;  %v1952_v59 = vperm.slane %v1078_v60, 0  ;;  %v544_v17 = vsel %vm516_vm13, %v401_v20, 0.0  ;;  %v1897_v48 = vperm.slane %v1478_v36, 1 }
  0x53   :  { %v1953_v31 = vperm.slane %v1413_v55, 3  ;;  %v590_v4 = vadd.f32 %v589_v10, %v428_v46  ;;  %v543_v24 = vadd.f32 %v542_v3, %v541_v44  ;;  %v502_v38 = vadd.f32 %v501_v1, %v1335_v53  ;;  %v1537_v10 = vld [vmem:[#allocation5 + $0x198] sm:$0x7] }
  0x54   :  { %v403_v18 = vmul.f32 %v1952_v59, %v1501_v63  ;;  %v1896_v49 = vperm.slane %v1478_v36, 2  ;;  %v1954_v9 = vperm.slane %v1078_v60, 1  ;;  %v546_v20 = vsel %vm516_vm13, %v402_v37, 0.0 }
  0x55   :  { %v430_v0 = vmul.f32 %v1953_v31, %v1227_v6  ;;  %v1890_v12 = vperm.slane %v1478_v36, 3  ;;  %v431_v6 = vmul.f32 %v1889_v34, %v1234_v2  ;;  %v591_v46 = vadd.f32 %v590_v4, %v429_v22 }
  0x56   :  { %v404_v59 = vmul.f32 %v1954_v9, %v1513_v52  ;;  %v545_v3 = vadd.f32 %v544_v17, %v543_v24  ;;  %v503_v53 = vadd.f32 %v502_v38, %v1340_v35  ;;  %v1893_v44 = vperm.slane %v1478_v36, 4  ;;  %v1551_v17 = vld [vmem:[#allocation5 + $0x1a0] sm:$0x7] }
  0x57   :  { %v1955_v1 = vperm.slane %v1078_v60, 2  ;;  %v548_v37 = vsel %vm516_vm13, %v403_v18, 0.0  ;;  %v225_v9 = vsel %vm200_vm14, %v1148_v29, %v1151_v30  ;;  %v1956_v2 = vperm.slane %v1413_v55, 5 }
  0x58   :  { %v592_v4 = vadd.f32 %v591_v46, %v430_v0  ;;  %v547_v35 = vadd.f32 %v546_v20, %v545_v3  ;;  %v504_v24 = vadd.f32 %v503_v53, %v1345_v23  ;;  %v1891_v38 = vperm.slane %v1478_v36, 5  ;;  %v1563_v0 = vld [vmem:[#allocation5 + $0x1a8] sm:$0x7] }
  0x59   :  { %v405_v31 = vmul.f32 %v1955_v1, %v1525_v45  ;;  %v432_v22 = vmul.f32 %v1956_v2, %v1236_v14  ;;  %v1957_v1 = vperm.slane %v1078_v60, 3  ;;  %v550_v34 = vsel %vm516_vm13, %v404_v59, 0.0 }
  0x5a   :  { %v1892_v29 = vperm.slane %v1478_v36, 6  ;;  %v433_v30 = vmul.f32 %v1900_v56, %v1238_v15  ;;  %v593_v14 = vadd.f32 %v592_v4, %v431_v6  ;;  %v549_v20 = vadd.f32 %v548_v37, %v547_v35  ;;  %v1576_v4 = vld [vmem:[#allocation5 + $0x1b0] sm:$0x7]  ;;  %v1672_v56 = vld [vmem:[#allocation5 + $0x1e8] sm:$0x7] }
  0x5b   :  { %v406_v18 = vmul.f32 %v1957_v1, %v1537_v10  ;;  %v505_v23 = vadd.f32 %v504_v24, %v1361_v11  ;;  %v1566_v46 = vrot.slane %v225_v9, 1  ;;  %v1958_v3 = vperm.slane %v1078_v60, 4 }
  0x5c   :  { %v552_v59 = vsel %vm516_vm13, %v405_v31, 0.0  ;;  %v1895_v2 = vperm.slane %v1478_v36, 7  ;;  %v434_v15 = vmul.f32 %v1899_v42, %v1244_v5  ;;  %v594_v6 = vadd.f32 %v593_v14, %v432_v22 }
  0x5d   :  { %v407_v53 = vmul.f32 %v1958_v3, %v1551_v17  ;;  %v551_v37 = vadd.f32 %v550_v34, %v549_v20  ;;  %v506_v11 = vadd.f32 %v505_v23, %v1374_v19  ;;  %v435_v9 = vmul.f32 %v1898_v21, %v1253_v33  ;;  %v1592_v19 = vld [vmem:[#allocation5 + $0x1b8] sm:$0x7]  ;;  %v1961_v3 = vld [vmem:[#allocation19_spill] sm:$0xff] }
  0x5e   :  { %v1959_v35 = vperm.slane %v1078_v60, 5  ;;  %v554_v24 = vsel %vm516_vm13, %v406_v18, 0.0  ;;  %v436_v5 = vmul.f32 %v1897_v48, %v1267_v40  ;;  %v437_v34 = vmul.f32 %v1896_v49, %v1269_v41  ;;  %v1976_v21 = vld [vmem:[#allocation14_spill] sm:$0xff] }
  0x5f   :  { %v595_v22 = vadd.f32 %v594_v6, %v433_v30  ;;  %v553_v1 = vadd.f32 %v552_v59, %v551_v37  ;;  %v507_v33 = vadd.f32 %v506_v11, %v1379_v57  ;;  %v438_v14 = vmul.f32 %v1890_v12, %v1271_v7  ;;  %v1606_v59 = vld [vmem:[#allocation5 + $0x1c0] sm:$0x7]  ;;  %v1962_v37 = vld [vmem:[#allocation20_spill] sm:$0xff] }
  0x60   :  { %v408_v31 = vmul.f32 %v1959_v35, %v1563_v0  ;;  %v1960_v18 = vperm.slane %v1078_v60, 6  ;;  %v556_v40 = vsel %vm516_vm13, %v407_v53, 0.0  ;;  %v283_v23 = vperm.slane %v1566_v46, 0 }
  0x61   :  { %v439_v41 = vmul.f32 %v1893_v44, %v1961_v3  ;;  %v596_v30 = vadd.f32 %v595_v22, %v434_v15  ;;  %v555_v57 = vadd.f32 %v554_v24, %v553_v1  ;;  %v508_v6 = vadd.f32 %v507_v33, %v1388_v54  ;;  %v1617_v3 = vld [vmem:[#allocation5 + $0x1c8] sm:$0x7]  ;;  %v1965_v54 = vld [vmem:[#allocation21_spill] sm:$0xff] }
  0x62   :  { %v409_v20 = vmul.f32 %v1960_v18, %v1576_v4  ;;  %v440_v7 = vmul.f32 %v1891_v38, %v1962_v37  ;;  %v1963_v11 = vperm.slane %v1078_v60, 7  ;;  %v558_v35 = vsel %vm516_vm13, %v408_v31, 0.0  ;;  %v1964_v24 = vld [vmem:[#allocation28_spill] sm:$0xff]  ;;  %v1641_v44 = vld [vmem:[#allocation5 + $0x1d8] sm:$0x7] }
  0x63   :  { %v284_v18 = vperm.slane %v1566_v46, 1  ;;  %v597_v12 = vadd.f32 %v596_v30, %v435_v9  ;;  %v557_v15 = vadd.f32 %v556_v40, %v555_v57  ;;  %v1894_v22 = vlaneseq  ;;  %v1623_v37 = vld [vmem:[#allocation5 + $0x1d0] sm:$0x7] }
  0x64   :  { %v410_v53 = vmul.f32 %v1963_v11, %v1592_v19  ;;  %v509_v1 = vadd.f32 %v508_v6, %v1964_v24  ;;  %v441_v33 = vmul.f32 %v1892_v29, %v1965_v54  ;;  %v1966_v60 = vperm.slane %v1115_v13, 0  ;;  %v1967_v6 = vld [vmem:[#allocation22_spill] sm:$0xff] }
  0x65   :  { %v560_v31 = vsel %vm516_vm13, %v409_v20, 0.0  ;;  %v285_v9 = vperm.slane %v1566_v46, 2  ;;  %v598_v30 = vadd.f32 %v597_v12, %v436_v5  ;;  %v559_v38 = vadd.f32 %v558_v35, %v557_v15 }
  0x66   :  { %v411_v11 = vmul.f32 %v1966_v60, %v1606_v59  ;;  %v1631_v40 = vshrl.u32 %v1894_v22, 7  ;;  %v510_v57 = vadd.f32 %v509_v1, %v1424_v16  ;;  %v442_v24 = vmul.f32 %v1895_v2, %v1967_v6  ;;  %v1970_v16 = vld [vmem:[#allocation11_spill] sm:$0xff]  ;;  %v1974_v2 = vld [vmem:[#allocation13_spill] sm:$0xff] }
  0x67   :  { %v1968_v54 = vperm.slane %v1115_v13, 1  ;;  %v562_v60 = vsel %vm516_vm13, %v410_v53, 0.0  ;;  %v599_v20 = vadd.f32 %v598_v30, %v437_v34  ;;  %v1969_v12 = vperm.slane %v1115_v13, 2  ;;  %v1651_v22 = vld [vmem:[#allocation5 + $0x1e0] sm:$0x7]  ;;  %v1972_v34 = vld [vmem:[#allocation12_spill] sm:$0xff] }
  0x68   :  { %v561_v35 = vadd.f32 %v560_v31, %v559_v38  ;;  %857 = vset.pattern.permute.xlu2 %v1631_v40  ;;  %v1971_v15 = vperm.slane %v1242_v62, 0  ;;  %v511_v6 = vadd.f32 %v510_v57, %v1429_v8  ;;  %v564_v53 = vsel %vm516_vm13, %v411_v11, 0.0 }
  0x69   :  { %v412_v29 = vmul.f32 %v1968_v54, %v1617_v3  ;;  %v413_v5 = vmul.f32 %v1969_v12, %v1623_v37  ;;  %v1973_v30 = vperm.slane %v1242_v62, 1  ;;  %v1975_v12 = vperm.slane %v1242_v62, 2 }
  0x6a   :  { %v451_v1 = vmul.f32 %v1971_v15, %v1970_v16  ;;  %v286_v31 = vperm.slane %v1566_v46, 3  ;;  %v600_v49 = vadd.f32 %v599_v20, %v438_v14  ;;  %v563_v48 = vadd.f32 %v562_v60, %v561_v35 }
  0x6b   :  { %v452_v54 = vmul.f32 %v1973_v30, %v1972_v34  ;;  %v453_v38 = vmul.f32 %v1975_v12, %v1974_v2  ;;  %v1977_v16 = vperm.slane %v1242_v62, 3  ;;  %v512_v57 = vadd.f32 %v511_v6, %v1460_v25  ;;  %v1979_v30 = vld [vmem:[#allocation15_spill] sm:$0xff] }
  0x6c   :  { %v1978_v11 = vperm.slane %v1115_v13, 3  ;;  %v566_v34 = vsel %vm516_vm13, %v412_v29, 0.0  ;;  %v1980_v42 = vperm.slane %v1242_v62, 4  ;;  %v601_v12 = vadd.f32 %v600_v49, %v439_v41  ;;  %v1685_v41 = vld [vmem:[#allocation5 + $0x1f0] sm:$0x7] }
  0x6d   :  { %v454_v8 = vmul.f32 %v1977_v16, %v1976_v21  ;;  %v1981_v14 = vperm.slane %v1115_v13, 4  ;;  %v565_v21 = vadd.f32 %v564_v53, %v563_v48  ;;  %v568_v25 = vsel %vm516_vm13, %v413_v5, 0.0  ;;  %v1982_v16 = vld [vmem:[#allocation24_spill] sm:$0xff] }
  0x6e   :  { %v414_v15 = vmul.f32 %v1978_v11, %v1641_v44  ;;  %v455_v2 = vmul.f32 %v1980_v42, %v1979_v30  ;;  %v513_v20 = vadd.f32 %v512_v57, %v1465_v50  ;;  %v615_v35 = vsel %vm516_vm13, %v451_v1, 0.0  ;;  %v1984_v1 = vld [vmem:[#allocation16_spill] sm:$0xff] }
  0x6f   :  { %v415_v60 = vmul.f32 %v1981_v14, %v1651_v22  ;;  %v616_v29 = vsel %vm516_vm13, %v452_v54, 0.0  ;;  %v618_v6 = vsel %vm516_vm13, %v453_v38, 0.0  ;;  %v443_v42 = vmul.f32 %v283_v23, %v1982_v16 }
  0x70   :  { %v602_v49 = vadd.f32 %v601_v12, %v440_v7  ;;  %v567_v11 = vadd.f32 %v566_v34, %v565_v21  ;;  %v617_v30 = vadd.f32 %v616_v29, %v615_v35  ;;  %514 = vadd.xlane.f32.xlu0 %v513_v20  ;;  %v1983_v48 = vperm.slane %v1115_v13, 5  ;;  %v1696_v12 = vld [vmem:[#allocation5 + $0x1f8] sm:$0x7] }
  0x71   :  { %v570_v5 = vsel %vm516_vm13, %v414_v15, 0.0  ;;  %v1985_v53 = vperm.slane %v1242_v62, 5  ;;  %v620_v38 = vsel %vm516_vm13, %v454_v8, 0.0  ;;  %v287_v57 = vperm.slane %v1566_v46, 4  ;;  %v1987_v15 = vld [vmem:[#allocation17_spill] sm:$0xff] }
  0x72   :  { %v416_v50 = vmul.f32 %v1983_v48, %v1672_v56  ;;  %v603_v7 = vadd.f32 %v602_v49, %v441_v33  ;;  %v569_v34 = vadd.f32 %v568_v25, %v567_v11  ;;  %v619_v14 = vadd.f32 %v618_v6, %v617_v30  ;;  %v1989_v8 = vld [vmem:[#allocation25_spill] sm:$0xff] }
  0x73   :  { %v456_v54 = vmul.f32 %v1985_v53, %v1984_v1  ;;  %v1986_v21 = vperm.slane %v1115_v13, 6  ;;  %v572_v35 = vsel %vm516_vm13, %v415_v60, 0.0  ;;  %v1988_v29 = vperm.slane %v1242_v62, 6  ;;  %v1991_v60 = vld [vmem:[#allocation18_spill] sm:$0xff] }
  0x74   :  { %v622_v48 = vsel %vm516_vm13, %v455_v2, 0.0  ;;  %v444_v33 = vmul.f32 %v284_v18, %v1989_v8  ;;  %v604_v49 = vadd.f32 %v603_v7, %v442_v24  ;;  %v571_v1 = vadd.f32 %v570_v5, %v569_v34  ;;  %v1993_v2 = vld [vmem:[#allocation26_spill] sm:$0xff]  ;;  %v1994_v7 = vld [vmem:[#allocation23_spill] sm:$0xff] }
  0x75   :  { %v417_v20 = vmul.f32 %v1986_v21, %v1685_v41  ;;  %v457_v16 = vmul.f32 %v1988_v29, %v1987_v15  ;;  %v621_v25 = vadd.f32 %v620_v38, %v619_v14  ;;  %v1990_v6 = vperm.slane %v1115_v13, 7  ;;  %v1996_v14 = vld [vmem:[#allocation27_spill] sm:$0xff] }
  0x76   :  { %v574_v30 = vsel %vm516_vm13, %v416_v50, 0.0  ;;  %v1992_v53 = vperm.slane %v1242_v62, 7  ;;  %v624_v15 = vsel %vm516_vm13, %v456_v54, 0.0  ;;  %v445_v29 = vmul.f32 %v285_v9, %v1993_v2 }
  0x77   :  { %v418_v11 = vmul.f32 %v1990_v6, %v1696_v12  ;;  %v605_v8 = vadd.f32 %v604_v49, %v443_v42  ;;  %v573_v24 = vadd.f32 %v572_v35, %v571_v1  ;;  %v623_v5 = vadd.f32 %v622_v48, %v621_v25 }
  0x78   :  { %v458_v21 = vmul.f32 %v1992_v53, %v1991_v60  ;;  %v288_v38 = vperm.slane %v1566_v46, 5  ;;  %v576_v13 = vsel %vm516_vm13, %v417_v20, 0.0  ;;  %v1995_v50 = vperm.slane %v1413_v55, 0 }
  0x79   :  { %v626_v62 = vsel %vm516_vm13, %v457_v16, 0.0  ;;  %v446_v54 = vmul.f32 %v286_v31, %v1996_v14  ;;  %v606_v6 = vadd.f32 %v605_v8, %v444_v33  ;;  %v575_v60 = vadd.f32 %v574_v30, %v573_v24  ;;  %v1999_v8 = vld [vmem:[#allocation29_spill] sm:$0xff] }
  0x7a   :  { %v459_v34 = vmul.f32 %v1995_v50, %v1994_v7  ;;  %v625_v53 = vadd.f32 %v624_v15, %v623_v5  ;;  %v289_v42 = vperm.slane %v1566_v46, 6  ;;  %v578_v35 = vsel %vm516_vm13, %v418_v11, 0.0 }
  0x7b   :  { %v1997_v20 = vperm.slane %v1413_v55, 1  ;;  %v628_v49 = vsel %vm516_vm13, %v458_v21, 0.0  ;;  %v447_v16 = vmul.f32 %v287_v57, %v1398_v58  ;;  %v607_v1 = vadd.f32 %v606_v6, %v445_v29 }
  0x7c   :  { %v577_v25 = vadd.f32 %v576_v13, %v575_v60  ;;  %v627_v2 = vadd.f32 %v626_v62, %v625_v53  ;;  %v290_v33 = vperm.slane %v1566_v46, 7  ;;  %v1998_v30 = vperm.slane %v1413_v55, 2 }
  0x7d   :  { %v460_v48 = vmul.f32 %v1997_v20, %v1367_v27  ;;  %v630_v11 = vsel %vm516_vm13, %v459_v34, 0.0  ;;  %v448_v27 = vmul.f32 %v288_v38, %v1999_v8  ;;  %v608_v21 = vadd.f32 %v607_v1, %v446_v54 }
  0x7e   :  { %v461_v15 = vmul.f32 %v1998_v30, %v1369_v43  ;;  %v579_v24 = vadd.f32 %v578_v35, %v577_v25  ;;  %v629_v5 = vadd.f32 %v628_v49, %v627_v2  ;;  %v2000_v58 = vperm.slane %v1413_v55, 3 }
  0x7f   :  { %v632_v13 = vsel %vm516_vm13, %v460_v48, 0.0  ;;  %v449_v7 = vmul.f32 %v289_v42, %v1435_v51  ;;  %v609_v43 = vadd.f32 %v608_v21, %v447_v16  ;;  %v2001_v34 = vperm.slane %v1413_v55, 4 }
  0x80   :  { %v462_v29 = vmul.f32 %v2000_v58, %v1419_v39  ;;  %580 = vadd.xlane.f32.xlu0 %v579_v24  ;;  %v631_v50 = vadd.f32 %v630_v11, %v629_v5  ;;  %v634_v14 = vsel %vm516_vm13, %v461_v15, 0.0  ;;  %v450_v54 = vmul.f32 %v290_v33, %v1437_v61 }
  0x81   :  { %v463_v62 = vmul.f32 %v2001_v34, %v1443_v47  ;;  %v610_v39 = vadd.f32 %v609_v43, %v448_v27  ;;  %v2002_v60 = vperm.slane %v1413_v55, 5  ;;  %v2003_v48 = vperm.slane %v1413_v55, 6 }
  0x82   :  { %v633_v6 = vadd.f32 %v632_v13, %v631_v50  ;;  %v636_v51 = vsel %vm516_vm13, %v462_v29, 0.0  ;;  %v2004_v61 = vperm.slane %v1413_v55, 7  ;;  %v2005_v30 = vperm.slane %v1478_v36, 0 }
  0x83   :  { %v464_v53 = vmul.f32 %v2002_v60, %v1455_v26  ;;  %v611_v35 = vadd.f32 %v610_v39, %v449_v7  ;;  %v465_v47 = vmul.f32 %v2003_v48, %v1475_v28  ;;  %v638_v49 = vsel %vm516_vm13, %v463_v62, 0.0 }
  0x84   :  { %v635_v20 = vadd.f32 %v634_v14, %v633_v6  ;;  %v466_v25 = vmul.f32 %v2004_v61, %v1489_v32  ;;  %v467_v15 = vmul.f32 %v2005_v30, %v1501_v63  ;;  %v2006_v28 = vperm.slane %v1478_v36, 1 }
  0x85   :  { %v612_v16 = vadd.f32 %v611_v35, %v450_v54  ;;  %v640_v2 = vsel %vm516_vm13, %v464_v53, 0.0  ;;  %v642_v11 = vsel %vm516_vm13, %v465_v47, 0.0  ;;  %v2007_v55 = vperm.slane %v1478_v36, 2 }
  0x86   :  { %v637_v1 = vadd.f32 %v636_v51, %v635_v20  ;;  %v468_v27 = vmul.f32 %v2006_v28, %v1513_v52  ;;  %v644_v21 = vsel %vm516_vm13, %v466_v25, 0.0  ;;  %v646_v5 = vsel %vm516_vm13, %v467_v15, 0.0  ;;  %v862_v52 = vld [vmem:[%s1858_s2] ss:$0 sm:$0xff]  ;;  %s962_s2 = smov [#allocation7]  }
  0x87   :  { %613 = vadd.xlane.f32.xlu1 %v612_v16  ;;  %v469_v32 = vmul.f32 %v2007_v55, %v1525_v45  ;;  %v2008_v63 = vperm.slane %v1478_v36, 3  ;;  %v2009_v43 = vperm.slane %v1478_v36, 4  ;;  %687 = vperm.xlu2 %857, %v862_v52   ;;  %v2010_v62 = vperm.slane %v1478_v36, 5  ;;  %s838_s24 = sshll.u32 %s962_s2, 4  ;;  %s839_s24 = int_to_ptr.vmem [resolvable:$true] %s838_s24 }
  0x88   :  { %v639_v26 = vadd.f32 %v638_v49, %v637_v1  ;;  %v648_v13 = vsel %vm516_vm13, %v468_v27, 0.0  ;;  %v2011_v39 = vperm.slane %v1478_v36, 6  ;;  %v691_v53 = vadd.s32 8, %v1631_v40 }
  0x89   :  { %v470_v29 = vmul.f32 %v2008_v63, %v1537_v10  ;;  %v471_v50 = vmul.f32 %v2009_v43, %v1551_v17  ;;  %v650_v45 = vsel %vm516_vm13, %v469_v32, 0.0  ;;  %v472_v14 = vmul.f32 %v2010_v62, %v1563_v0 }
  0x8a   :  { %v641_v8 = vadd.f32 %v640_v2, %v639_v26  ;;  %v473_v6 = vmul.f32 %v2011_v39, %v1576_v4  ;;  %v2012_v51 = vperm.slane %v1478_v36, 7  ;;  %v475_v0 = vmul.f32 %v283_v23, %v1606_v59 }
  0x8b   :  { %v652_v10 = vsel %vm516_vm13, %v470_v29, 0.0  ;;  %v654_v60 = vsel %vm516_vm13, %v471_v50, 0.0  ;;  %v656_v20 = vsel %vm516_vm13, %v472_v14, 0.0  ;;  %v476_v4 = vmul.f32 %v284_v18, %v1617_v3 }
  0x8c   :  { %v643_v24 = vadd.f32 %v642_v11, %v641_v8  ;;  %v474_v35 = vmul.f32 %v2012_v51, %v1592_v19  ;;  %v658_v47 = vsel %vm516_vm13, %v473_v6, 0.0  ;;  %v477_v36 = vmul.f32 %v285_v9, %v1623_v37 }
  0x8d   :  { %v662_v19 = vsel %vm516_vm13, %v475_v0, 0.0  ;;  %v478_v23 = vmul.f32 %v286_v31, %v1641_v44  ;;  %v664_v59 = vsel %vm516_vm13, %v476_v4, 0.0  ;;  %v479_v18 = vmul.f32 %v287_v57, %v1651_v22 }
  0x8e   :  { %v645_v58 = vadd.f32 %v644_v21, %v643_v24  ;;  %v660_v40 = vsel %vm516_vm13, %v474_v35, 0.0  ;;  %v666_v3 = vsel %vm516_vm13, %v477_v36, 0.0  ;;  %v480_v37 = vmul.f32 %v288_v38, %v1672_v56 }
  0x8f   :  { %858 = vset.pattern.permute.xlu2 %v691_v53  ;;  %v668_v9 = vsel %vm516_vm13, %v478_v23, 0.0  ;;  %v481_v44 = vmul.f32 %v289_v42, %v1685_v41  ;;  %v670_v31 = vsel %vm516_vm13, %v479_v18, 0.0  ;;  %v482_v22 = vmul.f32 %v290_v33, %v1696_v12 }
  0x90   :  { %v647_v7 = vadd.f32 %v646_v5, %v645_v58  ;;  %v672_v57 = vsel %vm516_vm13, %v480_v37, 0.0  ;;  %v961_v28 = vmov 0  }
  0x91   :  { %v674_v15 = vsel %vm516_vm13, %v481_v44, 0.0  ;;  %v676_v38 = vsel %vm516_vm13, %v482_v22, 0.0  ;;  %859 = vset.pattern.permute.xlu0 %v961_v28  ;;  %861 = vset.pattern.permute.xlu1 %v961_v28 }
  0x92   :  { %v649_v34 = vadd.f32 %v648_v13, %v647_v7 }
  0x94   :  { %v651_v54 = vadd.f32 %v650_v45, %v649_v34 }
  0x96   :  { %v653_v17 = vadd.f32 %v652_v10, %v651_v54 }
  0x97   :  { %693 = vperm.xlu2 %858, %v862_v52  }
  0x98   :  { %v655_v48 = vadd.f32 %v654_v60, %v653_v17 }
  0x9a   :  { %v657_v49 = vadd.f32 %v656_v20, %v655_v48 }
  0x9c   :  { %v659_v16 = vadd.f32 %v658_v47, %v657_v49 }
  0x9e   :  { %v661_v1 = vadd.f32 %v660_v40, %v659_v16 }
  0x9f   :  { %860 = vset.pattern.permute.xlu2 %v961_v28 }
  0xa0   :  { %v663_v61 = vadd.f32 %v662_v19, %v661_v1 }
  0xa2   :  { %v665_v25 = vadd.f32 %v664_v59, %v663_v61 }
  0xa4   :  { %v667_v2 = vadd.f32 %v666_v3, %v665_v25 }
  0xa6   :  { %v669_v26 = vadd.f32 %v668_v9, %v667_v2 }
  0xa8   :  { %v671_v30 = vadd.f32 %v670_v31, %v669_v26 }
  0xaa   :  { %v673_v56 = vadd.f32 %v672_v57, %v671_v30 }
  0xac   :  { %v675_v11 = vadd.f32 %v674_v15, %v673_v56 }
  0xae   :  { %v677_v8 = vadd.f32 %v676_v38, %v675_v11 }
  0xb0   :  { %678 = vadd.xlane.f32.xlu1 %v677_v8 }
  0xe1   :  { %v688_v42 = vpop.permute.xlu2 %687 }
  0xe3   :  { %v515_v41 = vpop.xlane.xlu0 %514 }
  0xe4   :  { %v697_v27 = vadd.f32 %v688_v42, %v515_v41 }
  0xe6   :  { %811 = vperm.xlu2 %860, %v697_v27   ;;  %v703_v46 = vsub.f32 0.0, %v697_v27 }
  0xe8   :  { %v707_v12 = vmul.f32 1.442695, %v703_v46 }
  0xea   :  { %863 = vpow2.f32 %v707_v12 }
  0xf0   :  { %v864_v63 = vpop.eup %863 }
  0xf1   :  { %v1844_v55 = vpop.permute.xlu2 %693  ;;  %v715_v7 = vadd.f32 1.0, %v864_v63 }
  0xf3   :  { %v581_v33 = vpop.xlane.xlu0 %580  ;;  %v730_v6 = vand.u32 2147483648, %v715_v7  ;;  %v728_v17 = vand.u32 2147483647, %v715_v7  ;;  %vm724_vm0 = vweird.f32 %v715_v7 }
  0xf4   :  { %v698_v32 = vadd.f32 %v1844_v55, %v581_v33 }
  0xf5   :  { %v731_v4 = vor.u32 1.1754944e-38, %v730_v6  ;;  %vm729_vm4 = vcmp.eq.f32.partialorder %v728_v17, 8.507059e+37 }
  0xf6   :  { %v704_v58 = vsub.f32 0.0, %v698_v32  ;;  %814 = vperm.xlu2 %860, %v698_v32  }
  0xf8   :  { %v709_v13 = vmul.f32 1.442695, %v704_v58 }
  0xfa   :  { %v614_v21 = vpop.xlane.xlu1 %613 }
  0xfb   :  { %v1842_v24 = vadd.f32 %v688_v42, %v614_v21 }
  0xfd   :  { %v705_v5 = vsub.f32 0.0, %v1842_v24 }
  0xff   :  { %v711_v29 = vmul.f32 1.442695, %v705_v5 }
 0x101   :  { %865 = vpow2.f32 %v711_v29 }
 0x102   :  { %867 = vpow2.f32 %v709_v13 }
 0x103   :  { %869 = vrcp.f32 %v715_v7 }
 0x107   :  { %v866_v52 = vpop.eup %865 }
 0x108   :  { %v868_v43 = vpop.eup %867  ;;  %v717_v50 = vadd.f32 1.0, %v866_v52 }
 0x109   :  { %v716_v45 = vadd.f32 1.0, %v868_v43  ;;  %v870_v34 = vpop.eup %869 }
 0x10a   :  { %871 = vrcp.f32 %v717_v50  ;;  %v720_v62 = vmul.f32 %v870_v34, %v715_v7  ;;  %vm725_vm15 = vweird.f32 %v870_v34  ;;  %v758_v35 = vand.u32 2147483647, %v717_v50 }
 0x10b   :  { %873 = vrcp.f32 %v716_v45  ;;  %v760_v20 = vand.u32 2147483648, %v717_v50  ;;  %v745_v49 = vand.u32 2147483648, %v716_v45  ;;  %vm726_vm2 = vmor %vm724_vm0, %vm725_vm15  ;;  %v743_v16 = vand.u32 2147483647, %v716_v45 }
 0x10c   :  { %v721_v54 = vsub.f32 1.0, %v720_v62  ;;  %vm754_vm5 = vweird.f32 %v717_v50  ;;  %vm739_vm8 = vweird.f32 %v716_v45  ;;  %vm759_vm9 = vcmp.eq.f32.partialorder %v758_v35, 8.507059e+37 }
 0x10d   :  { %v761_v23 = vor.u32 1.1754944e-38, %v760_v20  ;;  %v746_v18 = vor.u32 1.1754944e-38, %v745_v49  ;;  %vm744_vm11 = vcmp.eq.f32.partialorder %v743_v16, 8.507059e+37  ;;  %vm799_vm0 = vcmask 130112  }
 0x10e   :  { %v722_v53 = vmul.f32 %v870_v34, %v721_v54 }
 0x110   :  { %v872_v14 = vpop.eup %871  ;;  %v723_v0 = vadd.f32 %v870_v34, %v722_v53 }
 0x111   :  { %v874_v10 = vpop.eup %873  ;;  %v750_v39 = vmul.f32 %v872_v14, %v717_v50  ;;  %vm755_vm1 = vweird.f32 %v872_v14 }
 0x112   :  { %v735_v60 = vmul.f32 %v874_v10, %v716_v45  ;;  %vm740_vm3 = vweird.f32 %v874_v10  ;;  %v727_v36 = vsel %vm726_vm2, %v870_v34, %v723_v0  ;;  %vm756_vm6 = vmor %vm754_vm5, %vm755_vm1  ;;  %vm831_vm2 = vcmask 82944  }
 0x113   :  { %v751_v51 = vsub.f32 1.0, %v750_v39  ;;  %v732_v1 = vsel %vm729_vm4, %v731_v4, %v727_v36  ;;  %vm741_vm10 = vmor %vm739_vm8, %vm740_vm3 }
 0x114   :  { %v736_v48 = vsub.f32 1.0, %v735_v60  ;;  %785 = vperm.xlu0 %859, %v732_v1  }
 0x115   :  { %v752_v47 = vmul.f32 %v872_v14, %v751_v51 }
 0x116   :  { %v737_v40 = vmul.f32 %v874_v10, %v736_v48 }
 0x117   :  { %v753_v19 = vadd.f32 %v872_v14, %v752_v47 }
 0x118   :  { %v738_v59 = vadd.f32 %v874_v10, %v737_v40 }
 0x119   :  { %v757_v61 = vsel %vm756_vm6, %v872_v14, %v753_v19 }
 0x11a   :  { %v762_v3 = vsel %vm759_vm9, %v761_v23, %v757_v61  ;;  %v742_v25 = vsel %vm741_vm10, %v874_v10, %v738_v59 }
 0x11b   :  { %791 = vperm.xlu2 %860, %v762_v3   ;;  %v747_v37 = vsel %vm744_vm11, %v746_v18, %v742_v25 }
 0x11c   :  { %788 = vperm.xlu1 %861, %v747_v37  }
 0x123   :  { %v679_v9 = vpop.xlane.xlu1 %678 }
 0x124   :  { %v700_v2 = vadd.f32 %v1844_v55, %v679_v9  ;;  %817 = vperm.xlu1 %861, %v1842_v24   ;;  %v2013_v24 = vlaneseq }
 0x126   :  { %v706_v44 = vsub.f32 0.0, %v700_v2  ;;  %v702_v55 = vand.u32 127, %v2013_v24 }
 0x128   :  { %v713_v31 = vmul.f32 1.442695, %v706_v44  ;;  %v797_v32 = vadd.s32 4294967288, %v702_v55  ;;  %vm779_vm1 = vcmp.eq.s32.totalorder %v702_v55, 0 }
 0x12a   :  { %875 = vpow2.f32 %v713_v31 }
 0x130   :  { %v876_v26 = vpop.eup %875 }
 0x131   :  { %v718_v22 = vadd.f32 1.0, %v876_v26 }
 0x133   :  { %877 = vrcp.f32 %v718_v22  ;;  %v775_v56 = vand.u32 2147483648, %v718_v22  ;;  %v773_v11 = vand.u32 2147483647, %v718_v22  ;;  %vm769_vm13 = vweird.f32 %v718_v22 }
 0x135   :  { %v776_v28 = vor.u32 1.1754944e-38, %v775_v56  ;;  %vm774_vm15 = vcmp.eq.f32.partialorder %v773_v11, 8.507059e+37 }
 0x139   :  { %v878_v57 = vpop.eup %877 }
 0x13a   :  { %v765_v30 = vmul.f32 %v878_v57, %v718_v22  ;;  %vm770_vm12 = vweird.f32 %v878_v57 }
 0x13b   :  { %vm771_vm14 = vmor %vm769_vm13, %vm770_vm12 }
 0x13c   :  { %v766_v15 = vsub.f32 1.0, %v765_v30 }
 0x13e   :  { %v767_v38 = vmul.f32 %v878_v57, %v766_v15 }
 0x140   :  { %v768_v8 = vadd.f32 %v878_v57, %v767_v38  ;;  %v812_v27 = vpop.permute.xlu2 %811 }
 0x141   :  { %v822_v50 = vperm.slane %v812_v27, %v702_v55 }
 0x142   :  { %v772_v41 = vsel %vm771_vm14, %v878_v57, %v768_v8 }
 0x143   :  { %v777_v42 = vsel %vm774_vm15, %v776_v28, %v772_v41 }
 0x144   :  { %794 = vperm.xlu2 %860, %v777_v42  }
 0x14c   :  { %820 = vperm.xlu2 %860, %v700_v2  }
 0x150   :  { %v815_v46 = vpop.permute.xlu2 %814 }
 0x151   :  { %v823_v29 = vperm.slane %v815_v46, %v797_v32 }
 0x153   :  { %v824_v14 = vsel %vm799_vm0, %v823_v29, %v822_v50 }
 0x175   :  { %v792_v12 = vpop.permute.xlu2 %791 }
 0x176   :  { %v801_v45 = vperm.slane %v792_v12, %v702_v55 }
 0x186   :  { %v786_v5 = vpop.permute.xlu0 %785 }
 0x187   :  { %v796_v7 = vperm.slane %v786_v5, %v702_v55 }
 0x18e   :  { %v789_v33 = vpop.permute.xlu1 %788 }
 0x18f   :  { %v798_v63 = vperm.slane %v789_v33, %v797_v32 }
 0x191   :  { %v800_v62 = vsel %vm799_vm0, %v798_v63, %v796_v7 }
 0x196   :  { %v818_v58 = vpop.permute.xlu1 %817 }
 0x197   :  { %v825_v52 = vperm.slane %v818_v58, %v702_v55 }
 0x19e   :  { %v795_v21 = vpop.permute.xlu2 %794 }
 0x19f   :  { %v802_v13 = vperm.slane %v795_v21, %v797_v32 }
 0x1a1   :  { %v803_v10 = vsel %vm799_vm0, %v802_v13, %v801_v45 }
 0x1a2   :  { %v804_v39 = vsel %vm188_vm7, %v803_v10, %v800_v62 }
 0x1a6   :  { %v821_v43 = vpop.permute.xlu2 %820 }
 0x1a7   :  { %v826_v34 = vperm.slane %v821_v43, %v797_v32 }
 0x1a9   :  { %v827_v54 = vsel %vm799_vm0, %v826_v34, %v825_v52 }
 0x1aa   :  { %v828_v6 = vsel %vm188_vm7, %v827_v54, %v824_v14 }
 0x1ab   :  { %v830_v60 = vsel %vm779_vm1, %v804_v39, %v828_v6 }
 0x1ac   :  { %832 = vst.msk [vmem:[#allocation7] sm:$0x3] %vm831_vm2, %v830_v60 }
 0x1ad   :  { %843 = dma.vmem_to_hbm [thread:$0]  %s839_s24, 32, %s841_s27, [#allocation4]  }
 0x1ae   :  { %955 = dma.done.wait [#allocation4], 32  }
 0x1af   :  { %956 = vsyncadd [#allocation4], 4294967264 }
 0x1b0   :  { %848 = vsyncpa [#allocation3], 1 }
 0x1b1   :  { %849 = vsyncpa [#allocation6], 1 }
 0x1b2   :  { %850 = vsyncpa [#allocation4], 1 }

</bundles_post_ra>
